<compile_context>
chip_gen: v6e
topology: v6e:2x2x1
jax: 0.10.0
libtpu: 0.0.40
codegen_flags: <defaults>
</compile_context>

<pallas_src>
import functools

import jax
import jax.numpy as jnp
from jax.experimental import pallas as pl
from jax.experimental.pallas import tpu as pltpu

EPS = 1e-5

# Explicit VMEM budget: safe on v5e/v6e (128 MiB physical) and v7x (64 MiB).
# Pass-1 per-step footprint at tile_m=512, kkc_pad=2304, c_pad=512 is ~11 MiB
# (2x bf16 patch tile + weights + 2x bf16 y tile + stats) -> ample headroom.
_VMEM_LIMIT = 32 * 1024 * 1024


def _round_up(x, m):
    return (x + m - 1) // m * m


# --------------------------------------------------------------------------
# Pass 1: conv matmul + global BN sufficient-statistic accumulation.
# Grid (2, half_tiles): axis 0 "parallel" (per-core partial stats, v7x),
# axis 1 "arbitrary" (stats accumulator stays resident across M tiles).
# --------------------------------------------------------------------------
def _conv_stats_kernel(patches_ref, w_ref, y_ref, stats_ref):
    @pl.when(pl.program_id(1) == 0)
    def _init():
        stats_ref[...] = jnp.zeros_like(stats_ref)

    # MXU matmul: bf16 operands, f32 accumulation.
    y = jnp.dot(patches_ref[...], w_ref[...], preferred_element_type=jnp.float32)
    y_ref[...] = y.astype(y_ref.dtype)          # lane-dense bf16 store

    # No bias, no row mask: bias cancels under training-mode BN, and the
    # zero-padded rows produce y == 0 so they contribute exactly 0 here.
    s = jnp.sum(y, axis=0, keepdims=True)
    ss = jnp.sum(y * y, axis=0, keepdims=True)
    # Single combined (2, Cpad) read-modify-write instead of two sub-stores.
    stats_ref[0:2, :] = stats_ref[0:2, :] + jnp.concatenate([s, ss], axis=0)


# --------------------------------------------------------------------------
# Pass 2: pure FMA + ReLU epilogue with precomputed scale/shift.
# --------------------------------------------------------------------------
def _bn_relu_kernel(y_ref, affine_ref, out_ref):
    y = y_ref[...].astype(jnp.float32)
    scale = affine_ref[0:1, :]
    shift = affine_ref[1:2, :]
    out_ref[...] = jnp.maximum(y * scale + shift, 0.0).astype(out_ref.dtype)


# --------------------------------------------------------------------------
# Wrapper
# --------------------------------------------------------------------------
def _im2col_nhwc(x_nhwc, kernel, stride, padding):
    """Extract conv patches; column order (kh, kw, cin) matches the weight layout."""
    n, h, w, c = x_nhwc.shape
    xp = jnp.pad(x_nhwc, ((0, 0), (padding, padding), (padding, padding), (0, 0)))
    ho = (h + 2 * padding - kernel) // stride + 1
    wo = (w + 2 * padding - kernel) // stride + 1
    cols = []
    for kh in range(kernel):
        for kw in range(kernel):
            cols.append(xp[:, kh:kh + stride * ho:stride, kw:kw + stride * wo:stride, :])
    patches = jnp.concatenate(cols, axis=-1)             # (N, Ho, Wo, K*K*C)
    return patches.reshape(n * ho * wo, kernel * kernel * c), ho, wo


@functools.partial(jax.jit, static_argnames=("stride", "padding", "tile_m"))
def block_cnn_forward(x_nchw, conv_w, conv_b, gamma, beta, *, stride=1, padding=0,
                      tile_m=512):
    """x_nchw: (N, Cin, H, W); conv_w: (Cout, Cin, K, K); conv_b/gamma/beta: (Cout,).

    conv_b is accepted for API fidelity but unused: under training-mode BN the
    conv bias cancels exactly, so the final output is identical without it.
    tile_m: M-tile size (512-1024 recommended; must be a multiple of 16).
    """
    del conv_b  # cancels under training-mode BatchNorm
    n, cin, h, w = x_nchw.shape
    cout, _, k, _ = conv_w.shape

    # NCHW -> NHWC in bf16 so the materialized im2col is already half-width.
    # (If the surrounding model ran NHWC end-to-end these wrapper transposes
    # -- a full extra HBM round trip each -- would go away.)
    x_nhwc = jnp.transpose(x_nchw, (0, 2, 3, 1)).astype(jnp.bfloat16)
    patches, ho, wo = _im2col_nhwc(x_nhwc, k, stride, padding)       # (M, K*K*Cin) bf16
    m, kkc = patches.shape

    # Lane-dense padding: reduction dim and channel dim up to multiples of 128.
    kkc_pad = _round_up(kkc, 128)
    c_pad = _round_up(cout, 128)
    tile_m = max(16, min(tile_m, _round_up(m, 16)))
    m_pad = _round_up(m, 2 * tile_m)          # even split across the 2-way parallel axis
    half_tiles = m_pad // (2 * tile_m)
    num_tiles = 2 * half_tiles

    patches_p = jnp.pad(patches, ((0, m_pad - m), (0, kkc_pad - kkc)))

    # Weight matrix matching the (kh, kw, cin) column order of im2col, padded, bf16.
    w_mat = jnp.transpose(conv_w, (2, 3, 1, 0)).reshape(kkc, cout).astype(jnp.float32)
    w_p = jnp.pad(w_mat, ((0, kkc_pad - kkc), (0, c_pad - cout))).astype(jnp.bfloat16)

    # ---- Pass 1: conv + per-core BN sufficient statistics ----
    y_flat, stats2 = pl.pallas_call(
        _conv_stats_kernel,
        out_shape=(jax.ShapeDtypeStruct((m_pad, c_pad), jnp.bfloat16),
                   jax.ShapeDtypeStruct((16, c_pad), jnp.float32)),   # 2 x (8, Cpad) slabs
        grid=(2, half_tiles),
        in_specs=[
            pl.BlockSpec((tile_m, kkc_pad), lambda c, i, ht=half_tiles: (c * ht + i, 0)),
            pl.BlockSpec((kkc_pad, c_pad), lambda c, i: (0, 0)),       # weights (resident)
        ],
        out_specs=(
            pl.BlockSpec((tile_m, c_pad), lambda c, i, ht=half_tiles: (c * ht + i, 0)),
            pl.BlockSpec((8, c_pad), lambda c, i: (c, 0)),             # per-core stats slab
        ),
        compiler_params=pltpu.CompilerParams(
            dimension_semantics=("parallel", "arbitrary"),
            vmem_limit_bytes=_VMEM_LIMIT),
    )(patches_p, w_p)

    # ---- Tiny wrapper op: combine per-core partials, fold BN into scale/shift ----
    stats = stats2[0:8] + stats2[8:16]                    # (8, c_pad) f32
    inv_m = 1.0 / float(m)
    mean = stats[0] * inv_m
    var = jnp.maximum(stats[1] * inv_m - mean * mean, 0.0)   # guard cancellation
    gamma_p = jnp.zeros((c_pad,), jnp.float32).at[:cout].set(gamma.astype(jnp.float32))
    beta_p = jnp.zeros((c_pad,), jnp.float32).at[:cout].set(beta.astype(jnp.float32))
    scale = gamma_p * jax.lax.rsqrt(var + EPS)               # gamma / std
    shift = beta_p - mean * scale                            # beta - mean*scale
    affine = jnp.zeros((8, c_pad), jnp.float32).at[0].set(scale).at[1].set(shift)

    # ---- Pass 2: FMA + ReLU, output aliased onto y_flat (no extra HBM buffer) ----
    out_flat = pl.pallas_call(
        _bn_relu_kernel,
        out_shape=jax.ShapeDtypeStruct((m_pad, c_pad), jnp.bfloat16),
        grid=(num_tiles,),
        in_specs=[
            pl.BlockSpec((tile_m, c_pad), lambda i: (i, 0)),
            pl.BlockSpec((8, c_pad), lambda i: (0, 0)),
        ],
        out_specs=pl.BlockSpec((tile_m, c_pad), lambda i: (i, 0)),
        input_output_aliases={0: 0},
        compiler_params=pltpu.CompilerParams(
            dimension_semantics=("parallel",),
            vmem_limit_bytes=_VMEM_LIMIT),
    )(y_flat, affine)

    out_nhwc = out_flat[:m, :cout].reshape(n, ho, wo, cout)
    return jnp.transpose(out_nhwc, (0, 3, 1, 2)).astype(jnp.float32)   # back to NCHW


# --------------------------------------------------------------------------
# Pure-JAX reference (f32) and test
# --------------------------------------------------------------------------
def _reference(x_nchw, conv_w, conv_b, gamma, beta, *, stride, padding):
    y = jax.lax.conv_general_dilated(
        x_nchw.astype(jnp.float32), conv_w.astype(jnp.float32),
        window_strides=(stride, stride),
        padding=[(padding, padding), (padding, padding)],
        dimension_numbers=("NCHW", "OIHW", "NCHW"),
    ) + conv_b.reshape(1, -1, 1, 1)
    mean = jnp.mean(y, axis=(0, 2, 3), keepdims=True)
    var = jnp.mean((y - mean) ** 2, axis=(0, 2, 3), keepdims=True)
    y = (y - mean) * jax.lax.rsqrt(var + EPS)
    y = y * gamma.reshape(1, -1, 1, 1) + beta.reshape(1, -1, 1, 1)
    return jnp.maximum(y, 0.0)


if __name__ == "__main__":
    # Small shapes: N=2, Cin=4, H=W=16, Cout=8, kernel=3, stride=1, padding=1.
    N, CIN, H, W = 2, 4, 16, 16
    COUT, K, STRIDE, PAD = 8, 3, 1, 1

    key = jax.random.PRNGKey(0)
    kx, kw, kb, kg, kbt = jax.random.split(key, 5)
    x = jax.random.normal(kx, (N, CIN, H, W), dtype=jnp.float32)
    conv_w = jax.random.normal(kw, (COUT, CIN, K, K), dtype=jnp.float32) * 0.1
    conv_b = jax.random.normal(kb, (COUT,), dtype=jnp.float32) * 0.1
    gamma = 1.0 + 0.1 * jax.random.normal(kg, (COUT,), dtype=jnp.float32)
    beta = 0.1 * jax.random.normal(kbt, (COUT,), dtype=jnp.float32)

    # Small tile_m so the tiny test still exercises a multi-step pipelined grid
    # on both grid axes (production default is 512).
    out = block_cnn_forward(x, conv_w, conv_b, gamma, beta,
                            stride=STRIDE, padding=PAD, tile_m=128)
    out = jax.block_until_ready(out)

    ref = _reference(x, conv_w, conv_b, gamma, beta, stride=STRIDE, padding=PAD)
    assert out.shape == (N, COUT, H, W), out.shape
    # bf16 matmul operands + bf16 inter-pass/final storage (f32 accumulation,
    # f32 statistics): tolerance loosened vs. the pure-f32 reference.
    assert jnp.allclose(out, ref, atol=5e-2, rtol=5e-2), float(jnp.max(jnp.abs(out - ref)))

    print("KERNEL_OK")
</pallas_src>

<mosaic_0001>
module attributes {stable_mosaic.version = 11 : i64} {
  func.func @_conv_stats_kernel(%arg0: i32, %arg1: i32, %arg2: memref<128x128xbf16, #tpu.memory_space<vmem>>, %arg3: memref<128x128xbf16, #tpu.memory_space<vmem>>, %arg4: memref<128x128xbf16, #tpu.memory_space<vmem>>, %arg5: memref<8x128xf32, #tpu.memory_space<vmem>>) attributes {dimension_semantics = [#tpu.dimension_semantics<parallel>, #tpu.dimension_semantics<arbitrary>], iteration_bounds = array<i64: 2, 2>, scalar_prefetch = 0 : i64, scratch_operands = 0 : i64, tpu.core_type = #tpu.core_type<tc>, window_params = [{transform_indices = @transform_0, window_bounds = array<i64: 128, 128>}, {pipeline_mode = #tpu.pipeline_mode<synchronous>, transform_indices = @transform_1, window_bounds = array<i64: 128, 128>}, {transform_indices = @transform_2, window_bounds = array<i64: 128, 128>}, {transform_indices = @transform_3, window_bounds = array<i64: 8, 128>}]} {
    %c0_i32 = arith.constant 0 : i32
    %0 = arith.cmpi eq, %arg1, %c0_i32 : i32
    %1 = arith.extui %0 : i1 to i32
    %c0_i32_0 = arith.constant 0 : i32
    %2 = arith.cmpi ne, %1, %c0_i32_0 : i32
    scf.if %2 {
      %cst_12 = arith.constant 0.000000e+00 : f32
      %17 = vector.broadcast %cst_12 : f32 to vector<8x128xf32>
      %c0_13 = arith.constant 0 : index
      %c0_14 = arith.constant 0 : index
      %18 = vector.load %arg5[%c0_13, %c0_14] : memref<8x128xf32, #tpu.memory_space<vmem>>, vector<8x128xf32>
      tpu.vector_store %arg5[%c0_13, %c0_14], %17 {strides = array<i32>} : memref<8x128xf32, #tpu.memory_space<vmem>>, vector<8x128xf32>,
    } else {
    }
    %c0 = arith.constant 0 : index
    %c0_1 = arith.constant 0 : index
    %3 = vector.load %arg2[%c0, %c0_1] : memref<128x128xbf16, #tpu.memory_space<vmem>>, vector<128x128xbf16>
    %c0_2 = arith.constant 0 : index
    %c0_3 = arith.constant 0 : index
    %4 = vector.load %arg3[%c0_2, %c0_3] : memref<128x128xbf16, #tpu.memory_space<vmem>>, vector<128x128xbf16>
    %cst = arith.constant dense<0.000000e+00> : vector<128x128xf32>
    %5 = tpu.matmul %3, %4, %cst {dimension_numbers = #tpu.dot_dimension_numbers<[1], [0], [0], [1], [0, 0, 1, 1], [], []>} : vector<128x128xbf16>, vector<128x128xbf16>, vector<128x128xf32> -> vector<128x128xf32>
    %6 = arith.truncf %5 : vector<128x128xf32> to vector<128x128xbf16>
    %c0_4 = arith.constant 0 : index
    %c0_5 = arith.constant 0 : index
    %7 = vector.load %arg4[%c0_4, %c0_5] : memref<128x128xbf16, #tpu.memory_space<vmem>>, vector<128x128xbf16>
    tpu.vector_store %arg4[%c0_4, %c0_5], %6 {strides = array<i32>} : memref<128x128xbf16, #tpu.memory_space<vmem>>, vector<128x128xbf16>,
    %cst_6 = arith.constant dense<0.000000e+00> : vector<128xf32>
    %8 = vector.multi_reduction <add>, %5, %cst_6 [0] : vector<128x128xf32> to vector<128xf32>
    %9 = vector.shape_cast %8 : vector<128xf32> to vector<1x128xf32>
    %10 = arith.mulf %5, %5 : vector<128x128xf32>
    %cst_7 = arith.constant dense<0.000000e+00> : vector<128xf32>
    %11 = vector.multi_reduction <add>, %10, %cst_7 [0] : vector<128x128xf32> to vector<128xf32>
    %12 = vector.shape_cast %11 : vector<128xf32> to vector<1x128xf32>
    %c0_8 = arith.constant 0 : index
    %c0_9 = arith.constant 0 : index
    %13 = vector.load %arg5[%c0_8, %c0_9] : memref<8x128xf32, #tpu.memory_space<vmem>>, vector<2x128xf32>
    %14 = tpu.concatenate %9, %12 in 0 : vector<1x128xf32>, vector<1x128xf32> -> vector<2x128xf32>
    %15 = arith.addf %13, %14 : vector<2x128xf32>
    %c0_10 = arith.constant 0 : index
    %c0_11 = arith.constant 0 : index
    %16 = vector.load %arg5[%c0_10, %c0_11] : memref<8x128xf32, #tpu.memory_space<vmem>>, vector<2x128xf32>
    tpu.vector_store %arg5[%c0_10, %c0_11], %15 {strides = array<i32>} : memref<8x128xf32, #tpu.memory_space<vmem>>, vector<2x128xf32>,
    return
  }
  func.func @transform_0(%arg0: i32, %arg1: i32) -> (i32, i32) {
    %c2_i32 = arith.constant 2 : i32
    %0 = arith.muli %arg0, %c2_i32 : i32
    %1 = arith.addi %0, %arg1 : i32
    %c0_i32 = arith.constant 0 : i32
    %c0_i32_0 = arith.constant 0 : i32
    return %1, %c0_i32 : i32, i32
  }
  func.func @transform_1(%arg0: i32, %arg1: i32) -> (i32, i32) {
    %c0_i32 = arith.constant 0 : i32
    %c0_i32_0 = arith.constant 0 : i32
    %c0_i32_1 = arith.constant 0 : i32
    return %c0_i32, %c0_i32_0 : i32, i32
  }
  func.func @transform_2(%arg0: i32, %arg1: i32) -> (i32, i32) {
    %c2_i32 = arith.constant 2 : i32
    %0 = arith.muli %arg0, %c2_i32 : i32
    %1 = arith.addi %0, %arg1 : i32
    %c0_i32 = arith.constant 0 : i32
    %c0_i32_0 = arith.constant 0 : i32
    return %1, %c0_i32 : i32, i32
  }
  func.func @transform_3(%arg0: i32, %arg1: i32) -> (i32, i32) {
    %c0_i32 = arith.constant 0 : i32
    %c0_i32_0 = arith.constant 0 : i32
    return %arg0, %c0_i32 : i32, i32
  }
}

module attributes {stable_mosaic.version = 11 : i64} {
  func.func @_bn_relu_kernel(%arg0: i32, %arg1: memref<128x128xbf16, #tpu.memory_space<vmem>>, %arg2: memref<8x128xf32, #tpu.memory_space<vmem>>, %arg3: memref<128x128xbf16, #tpu.memory_space<vmem>>) attributes {dimension_semantics = [#tpu.dimension_semantics<parallel>], iteration_bounds = array<i64: 4>, scalar_prefetch = 0 : i64, scratch_operands = 0 : i64, tpu.core_type = #tpu.core_type<tc>, window_params = [{transform_indices = @transform_0, window_bounds = array<i64: 128, 128>}, {pipeline_mode = #tpu.pipeline_mode<synchronous>, transform_indices = @transform_1, window_bounds = array<i64: 8, 128>}, {transform_indices = @transform_2, window_bounds = array<i64: 128, 128>}]} {
    %c0 = arith.constant 0 : index
    %c0_0 = arith.constant 0 : index
    %0 = vector.load %arg1[%c0, %c0_0] : memref<128x128xbf16, #tpu.memory_space<vmem>>, vector<128x128xbf16>
    %1 = arith.extf %0 : vector<128x128xbf16> to vector<128x128xf32>
    %c0_1 = arith.constant 0 : index
    %c0_2 = arith.constant 0 : index
    %2 = vector.load %arg2[%c0_1, %c0_2] : memref<8x128xf32, #tpu.memory_space<vmem>>, vector<1x128xf32>
    %c1 = arith.constant 1 : index
    %c0_3 = arith.constant 0 : index
    %3 = vector.load %arg2[%c1, %c0_3] : memref<8x128xf32, #tpu.memory_space<vmem>>, vector<1x128xf32>
    %4 = vector.broadcast %2 : vector<1x128xf32> to vector<128x128xf32>
    %5 = arith.mulf %1, %4 : vector<128x128xf32>
    %6 = vector.broadcast %3 : vector<1x128xf32> to vector<128x128xf32>
    %7 = arith.addf %5, %6 : vector<128x128xf32>
    %cst = arith.constant 0.000000e+00 : f32
    %8 = vector.broadcast %cst : f32 to vector<128x128xf32>
    %9 = arith.maximumf %7, %8 : vector<128x128xf32>
    %10 = arith.truncf %9 : vector<128x128xf32> to vector<128x128xbf16>
    %c0_4 = arith.constant 0 : index
    %c0_5 = arith.constant 0 : index
    %11 = vector.load %arg3[%c0_4, %c0_5] : memref<128x128xbf16, #tpu.memory_space<vmem>>, vector<128x128xbf16>
    tpu.vector_store %arg3[%c0_4, %c0_5], %10 {strides = array<i32>} : memref<128x128xbf16, #tpu.memory_space<vmem>>, vector<128x128xbf16>,
    return
  }
  func.func @transform_0(%arg0: i32) -> (i32, i32) {
    %c0_i32 = arith.constant 0 : i32
    %c0_i32_0 = arith.constant 0 : i32
    return %arg0, %c0_i32 : i32, i32
  }
  func.func @transform_1(%arg0: i32) -> (i32, i32) {
    %c0_i32 = arith.constant 0 : i32
    %c0_i32_0 = arith.constant 0 : i32
    %c0_i32_1 = arith.constant 0 : i32
    return %c0_i32, %c0_i32_0 : i32, i32
  }
  func.func @transform_2(%arg0: i32) -> (i32, i32) {
    %c0_i32 = arith.constant 0 : i32
    %c0_i32_0 = arith.constant 0 : i32
    return %arg0, %c0_i32 : i32, i32
  }
}

</mosaic_0001>

<bundles_post_ra>
// kernel: block_cnn_forward.3
= control target key start
LH: loop header
LB: loop body
LE: loop exit
PB: predicated region body
PF: predicated region fallthrough
CT: control target
= control target key end

     0   :  { %s535_s9 = smov 0   ;;  %s575_s0 = inlined_call_operand.vmem [shape: bf16[512,128], index: 0, kind: input, shape index: {}, may-alias: {0,2}]   ;;  %s576_s1 = inlined_call_operand.vmem [shape: f32[8,128], index: 1, kind: input, shape index: {}]   ;;  %s577_s2 = inlined_call_operand.vmem [shape: bf16[512,128], index: 2, kind: output, shape index: {}, may-alias: {0,2}]  }
   0x1 LB: > { %s373_s10 = sadd.s32 4294967295, %s518_s9   ;;  %p377_p0 = scmp.ge.s32.totalorder %s518_s9, 1  ;;  %s518_s9 = sphi %s535_s9, %s12_s9  }
   0x2   : > { %p113_p1 = scmp.lt.s32.totalorder %s518_s9, 5 }
   0x4   : > { %p114_p2 = pnand %p377_p0, %p113_p1 }
   0x5   : > { %s378_s11 = sshll.u32 (!%p114_p2), %s373_s10, 4 }
   0x6   : > { %117 = sbr.rel (%p114_p2) target bundleno = 37 (0x25), region = 28  ;;  %p136_p3 = scmp.lt.s32.totalorder (!%p114_p2), %s378_s11, 63 }
   0xb   : > { %s579_s11 = smov (!%p136_p3, %s378_s11), 63  ;;  %v382_v16 = vld [vmem:[%s576_s1] ss:$0 sm:$0xff]  ;;  %v383_v29 = vld [vmem:[%s576_s1 + $0x1] ss:$0 sm:$0xff] }
   0xc   : > { %s379_s12 = sshll.u32 %s579_s11, 2 }
   0xd   : > { %s139_s15 = scalar_lea.vmem %s575_s0, %s379_s12  ;;  %s562_s22 = scalar_lea.vmem %s577_s2, %s379_s12 }
   0xe   : > { %v419_v0 = vld [vmem:[%s139_s15] sm:$0xff]   ;;  %v490_v1 = vld [vmem:[%s139_s15 + $0x8] sm:$0xff]   ;;  %v491_v2 = vld [vmem:[%s139_s15 + $0x10] sm:$0xff]  }
   0xf   : > { %v420_v3 = vunpack.c.l.bf16 %v419_v0  ;;  %v421_v4 = vunpack.c.h.bf16 %v419_v0  ;;  %v424_v5 = vunpack.c.l.bf16 %v490_v1  ;;  %v425_v6 = vunpack.c.h.bf16 %v490_v1  ;;  %v492_v7 = vld [vmem:[%s139_s15 + $0x18] sm:$0xff]   ;;  %v493_v8 = vld [vmem:[%s139_s15 + $0x20] sm:$0xff]   ;;  %v494_v9 = vld [vmem:[%s139_s15 + $0x28] sm:$0xff]  }
  0x10   : > { %v428_v10 = vunpack.c.l.bf16 %v491_v2  ;;  %v429_v11 = vunpack.c.h.bf16 %v491_v2  ;;  %v432_v12 = vunpack.c.l.bf16 %v492_v7  ;;  %v433_v13 = vunpack.c.h.bf16 %v492_v7  ;;  %v495_v14 = vld [vmem:[%s139_s15 + $0x30] sm:$0xff]   ;;  %v496_v15 = vld [vmem:[%s139_s15 + $0x38] sm:$0xff]  }
  0x11   : > { %v436_v17 = vunpack.c.l.bf16 %v493_v8  ;;  %v437_v18 = vunpack.c.h.bf16 %v493_v8  ;;  %v440_v19 = vunpack.c.l.bf16 %v494_v9  ;;  %v441_v20 = vunpack.c.h.bf16 %v494_v9 }
  0x12   : > { %v444_v21 = vunpack.c.l.bf16 %v495_v14  ;;  %v445_v22 = vunpack.c.h.bf16 %v495_v14  ;;  %v448_v23 = vunpack.c.l.bf16 %v496_v15  ;;  %v449_v24 = vunpack.c.h.bf16 %v496_v15 }
  0x13   : > { %v185_v25 = vmul.f32 %v420_v3, %v382_v16  ;;  %v186_v26 = vmul.f32 %v421_v4, %v382_v16  ;;  %v187_v27 = vmul.f32 %v424_v5, %v382_v16  ;;  %v188_v28 = vmul.f32 %v425_v6, %v382_v16 }
  0x14   : > { %v189_v30 = vmul.f32 %v428_v10, %v382_v16  ;;  %v190_v31 = vmul.f32 %v429_v11, %v382_v16  ;;  %v191_v32 = vmul.f32 %v432_v12, %v382_v16  ;;  %v192_v33 = vmul.f32 %v433_v13, %v382_v16 }
  0x15   : > { %v193_v34 = vmul.f32 %v436_v17, %v382_v16  ;;  %v194_v35 = vmul.f32 %v437_v18, %v382_v16  ;;  %v195_v36 = vmul.f32 %v440_v19, %v382_v16  ;;  %v196_v37 = vmul.f32 %v441_v20, %v382_v16 }
  0x16   : > { %v197_v38 = vmul.f32 %v444_v21, %v382_v16  ;;  %v198_v39 = vmul.f32 %v445_v22, %v382_v16  ;;  %v199_v40 = vmul.f32 %v448_v23, %v382_v16  ;;  %v200_v41 = vmul.f32 %v449_v24, %v382_v16 }
  0x17   : > { %v205_v42 = vadd.f32 %v383_v29, %v185_v25  ;;  %v206_v43 = vadd.f32 %v383_v29, %v186_v26  ;;  %v207_v44 = vadd.f32 %v383_v29, %v187_v27  ;;  %v208_v45 = vadd.f32 %v383_v29, %v188_v28 }
  0x18   : > { %v209_v46 = vadd.f32 %v383_v29, %v189_v30  ;;  %v210_v47 = vadd.f32 %v383_v29, %v190_v31  ;;  %v211_v48 = vadd.f32 %v383_v29, %v191_v32  ;;  %v212_v49 = vadd.f32 %v383_v29, %v192_v33 }
  0x19   : > { %v221_v50 = vmax.f32 %v205_v42, 0.0  ;;  %v222_v51 = vmax.f32 %v206_v43, 0.0  ;;  %v223_v52 = vmax.f32 %v207_v44, 0.0  ;;  %v224_v53 = vmax.f32 %v208_v45, 0.0 }
  0x1a   : > { %v225_v54 = vmax.f32 %v209_v46, 0.0  ;;  %v226_v55 = vmax.f32 %v210_v47, 0.0  ;;  %v227_v56 = vmax.f32 %v211_v48, 0.0  ;;  %v228_v57 = vmax.f32 %v212_v49, 0.0 }
  0x1b   : > { %v453_v58 = vpack.c.bf16 %v222_v51, %v221_v50  ;;  %v458_v59 = vpack.c.bf16 %v224_v53, %v223_v52  ;;  %v213_v60 = vadd.f32 %v383_v29, %v193_v34  ;;  %v214_v61 = vadd.f32 %v383_v29, %v194_v35 }
  0x1c   : > { %v463_v62 = vpack.c.bf16 %v226_v55, %v225_v54  ;;  %v468_v63 = vpack.c.bf16 %v228_v57, %v227_v56  ;;  %v215_v0 = vadd.f32 %v383_v29, %v195_v36  ;;  %v216_v1 = vadd.f32 %v383_v29, %v196_v37 }
  0x1d   : > { %454 = vst [vmem:[%s562_s22] sm:$0xff] %v453_v58   ;;  %497 = vst [vmem:[%s562_s22 + $0x8] sm:$0xff] %v458_v59   ;;  %v229_v2 = vmax.f32 %v213_v60, 0.0  ;;  %v230_v3 = vmax.f32 %v214_v61, 0.0  ;;  %v217_v4 = vadd.f32 %v383_v29, %v197_v38  ;;  %v218_v5 = vadd.f32 %v383_v29, %v198_v39 }
  0x1e   : > { %498 = vst [vmem:[%s562_s22 + $0x10] sm:$0xff] %v463_v62   ;;  %499 = vst [vmem:[%s562_s22 + $0x18] sm:$0xff] %v468_v63   ;;  %v231_v6 = vmax.f32 %v215_v0, 0.0  ;;  %v232_v7 = vmax.f32 %v216_v1, 0.0  ;;  %v219_v8 = vadd.f32 %v383_v29, %v199_v40  ;;  %v220_v9 = vadd.f32 %v383_v29, %v200_v41 }
  0x1f   : > { %v473_v10 = vpack.c.bf16 %v230_v3, %v229_v2  ;;  %v233_v11 = vmax.f32 %v217_v4, 0.0  ;;  %v234_v12 = vmax.f32 %v218_v5, 0.0 }
  0x20   : > { %v478_v13 = vpack.c.bf16 %v232_v7, %v231_v6  ;;  %v235_v14 = vmax.f32 %v219_v8, 0.0  ;;  %v236_v15 = vmax.f32 %v220_v9, 0.0 }
  0x21   : > { %500 = vst [vmem:[%s562_s22 + $0x20] sm:$0xff] %v473_v10   ;;  %v483_v16 = vpack.c.bf16 %v234_v12, %v233_v11 }
  0x22   : > { %501 = vst [vmem:[%s562_s22 + $0x28] sm:$0xff] %v478_v13   ;;  %v488_v17 = vpack.c.bf16 %v236_v15, %v235_v14 }
  0x23   : > { %502 = vst [vmem:[%s562_s22 + $0x30] sm:$0xff] %v483_v16  }
  0x24   : > { %503 = vst [vmem:[%s562_s22 + $0x38] sm:$0xff] %v488_v17  }
  0x25 PF: > { %s12_s9 = sadd.s32 1, %s518_s9  }
  0x26   : > { %p9_p4 = scmp.ge.s32.totalorder %s12_s9, 6  }
  0x28   :  { %11 = sbr.rel (!%p9_p4) target bundleno = 1 (0x1), region = 58 }

// kernel: block_cnn_forward.2
= control target key start
LH: loop header
LB: loop body
LE: loop exit
PB: predicated region body
PF: predicated region fallthrough
CT: control target
= control target key end

     0   :  { %s996_s12 = smov 0   ;;  %s998_s13 = smov 0   ;;  %s1099_s0 = inlined_call_operand.vmem [shape: bf16[512,128], index: 0, kind: input, shape index: {}]   ;;  %s1100_s1 = inlined_call_operand.vmem [shape: bf16[128,128], index: 1, kind: input, shape index: {}]   ;;  %s1101_s2 = inlined_call_operand.vmem [shape: bf16[512,128], index: 2, kind: output, shape index: {0}]   ;;  %s1102_s3 = inlined_call_operand.vmem [shape: f32[16,128], index: 3, kind: output, shape index: {1}]  }
   0x1   :  { %s1000_s14 = smov 0   ;;  %s1002_s15 = smov 0  }
   0x2   :  { %s1004_s16 = smov 0  }
   0x3 LB: > { %s23_s17 = sadd.s32 1, %s965_s14  ;;  %s26_s18 = sadd.s32 1, %s969_s15  ;;  %s973_s16 = sphi %s1004_s16, %s14_s16   ;;  %s969_s15 = sphi %s1002_s15, %s1106_s15   ;;  %s965_s14 = sphi %s1000_s14, %s1105_s14   ;;  %s961_s13 = sphi %s998_s13, %s1104_s13   ;;  %s957_s12 = sphi %s996_s12, %s1103_s12  }
   0x4   : > { %p24_p0 = scmp.ge.s32.totalorder %s23_s17, 2  ;;  %p708_p1 = scmp.ge.s32.totalorder %s973_s16, 1 }
   0x5   : > { %p165_p2 = scmp.lt.s32.totalorder %s973_s16, 5 }
   0x6   : > { %s1108_s17 = smov (%p24_p0, %s23_s17), 0  ;;  %s1110_s18 = smov (!%p24_p0, %s26_s18), %s969_s15 }
   0x7   : > { %p166_p3 = pnand %p708_p1, %p165_p2  ;;  %p28_p4 = scmp.ge.s32.totalorder %s1110_s18, 2 }
   0x8   : > { %s709_s19 = sshll.u32 (!%p166_p3), %s961_s13, 1  ;;  %p217_p5 = scmp.lt.s32.totalorder (!%p166_p3), %s961_s13, 1 }
   0x9   : > { %s1112_s18 = smov (%p28_p4, %s1110_s18), 0  ;;  %169 = sbr.rel (%p166_p3) target bundleno = 304 (0x130), region = 28 }
   0xa   : > { %s198_s20 = sadd.s32 (!%p166_p3), %s957_s12, %s709_s19  ;;  %p716_p7 = scmp.ne.s32.totalorder (!%p166_p3), %s957_s12, 0 }
   0xb   : > { %s710_s21 = sshll.u32 (!%p166_p3), %s198_s20, 4 }
   0xc   : > { %p200_p6 = scmp.lt.s32.totalorder (!%p166_p3), %s710_s21, 63 }
   0xe   : > { %s1114_s13 = smov (!%p217_p5, %s961_s13), 1  ;;  %s1116_s21 = smov (!%p200_p6, %s710_s21), 63 }
   0xf   : > { %s715_s22 = sshll.u32 %s1114_s13, 3  ;;  %s711_s23 = sshll.u32 %s1116_s21, 2 }
  0x10   : > { %s1029_s26 = scalar_lea.vmem %s1102_s3, %s715_s22  ;;  %s1034_s29 = scalar_lea.vmem %s1099_s0, %s711_s23 }
  0x11   : > { %s1039_s5 = scalar_lea.vmem %s1101_s2, %s711_s23  ;;  %225 = sbr.rel (%p716_p7) target bundleno = 24 (0x18), region = 32 }
  0x16   : > { %v975_v0 = vmov 0.0  }
  0x17   : > { %226 = vst [vmem:[%s1029_s26] sm:$0xff] %v975_v0 }
  0x18 PF: > { %v919_v1 = vld [vmem:[%s1100_s1 + $0x38] sm:$0xff]   ;;  %v920_v2 = vld [vmem:[%s1100_s1 + $0x30] sm:$0xff]   ;;  %v921_v3 = vld [vmem:[%s1100_s1 + $0x28] sm:$0xff]   ;;  %vm591_vm0 = vcmask 1040384  }
  0x19   : > { %830 = vmatprep.subr.bf16.mxu0 %v919_v1  ;;  %862 = vmatprep.subr.bf16.mxu1 %v919_v1  ;;  %v922_v4 = vld [vmem:[%s1100_s1 + $0x20] sm:$0xff]   ;;  %v923_v6 = vld [vmem:[%s1100_s1 + $0x18] sm:$0xff]   ;;  %v924_v8 = vld [vmem:[%s1100_s1 + $0x10] sm:$0xff]  }
  0x1a   : > { %831 = vmatpush3.bf16.msra.mxu0 %v919_v1  ;;  %870 = vmatpush3.bf16.msra.mxu1 %v919_v1  ;;  %v927_v5 = vld [vmem:[%s1034_s29] sm:$0xff]   ;;  %v925_v9 = vld [vmem:[%s1100_s1 + $0x8] sm:$0xff]   ;;  %v929_v13 = vld [vmem:[%s1034_s29 + $0x10] sm:$0xff]  }
  0x1b   : > { %832 = vmatprep.subr.bf16.mxu0 %v920_v2  ;;  %863 = vmatprep.subr.bf16.mxu1 %v920_v2  ;;  %v931_v7 = vld [vmem:[%s1034_s29 + $0x20] sm:$0xff]   ;;  %v928_v11 = vld [vmem:[%s1034_s29 + $0x8] sm:$0xff]   ;;  %v933_v14 = vld [vmem:[%s1034_s29 + $0x30] sm:$0xff]  }
  0x1c   : > { %846 = vmatprep.mubr.bf16.mxu0 %v927_v5  ;;  %854 = vmatprep.mubr.bf16.mxu1 %v931_v7  ;;  %v926_v10 = vld [vmem:[%s1100_s1] sm:$0xff]   ;;  %v932_v12 = vld [vmem:[%s1034_s29 + $0x28] sm:$0xff]   ;;  %v930_v15 = vld [vmem:[%s1034_s29 + $0x18] sm:$0xff]  }
  0x1d   : > { %v934_v16 = vld [vmem:[%s1034_s29 + $0x38] sm:$0xff]  }
  0x1e   : > { %833 = vmatpush3.bf16.msra.mxu0 %v920_v2  ;;  %871 = vmatpush3.bf16.msra.mxu1 %v920_v2 }
  0x1f   : > { %834 = vmatprep.subr.bf16.mxu0 %v921_v3  ;;  %864 = vmatprep.subr.bf16.mxu1 %v921_v3 }
  0x22   : > { %835 = vmatpush3.bf16.msra.mxu0 %v921_v3  ;;  %872 = vmatpush3.bf16.msra.mxu1 %v921_v3 }
  0x23   : > { %836 = vmatprep.subr.bf16.mxu0 %v922_v4  ;;  %865 = vmatprep.subr.bf16.mxu1 %v922_v4 }
  0x26   : > { %837 = vmatpush3.bf16.msra.mxu0 %v922_v4  ;;  %873 = vmatpush3.bf16.msra.mxu1 %v922_v4 }
  0x27   : > { %838 = vmatprep.subr.bf16.mxu0 %v923_v6  ;;  %866 = vmatprep.subr.bf16.mxu1 %v923_v6 }
  0x2a   : > { %839 = vmatpush3.bf16.msra.mxu0 %v923_v6  ;;  %874 = vmatpush3.bf16.msra.mxu1 %v923_v6 }
  0x2b   : > { %840 = vmatprep.subr.bf16.mxu0 %v924_v8  ;;  %867 = vmatprep.subr.bf16.mxu1 %v924_v8 }
  0x2e   : > { %841 = vmatpush3.bf16.msra.mxu0 %v924_v8  ;;  %875 = vmatpush3.bf16.msra.mxu1 %v924_v8 }
  0x2f   : > { %842 = vmatprep.subr.bf16.mxu0 %v925_v9  ;;  %868 = vmatprep.subr.bf16.mxu1 %v925_v9 }
  0x32   : > { %843 = vmatpush3.bf16.msra.mxu0 %v925_v9  ;;  %876 = vmatpush3.bf16.msra.mxu1 %v925_v9 }
  0x33   : > { %844 = vmatprep.subr.bf16.mxu0 %v926_v10  ;;  %869 = vmatprep.subr.bf16.mxu1 %v926_v10 }
  0x36   : > { %845 = vmatpush3.bf16.msra.mxu0 %v926_v10  ;;  %877 = vmatpush3.bf16.msra.mxu1 %v926_v10 }
  0x39   : > { %847 = vmatmul.mubr.bf16.vlgmr.msra.gmra.mxu0 %v928_v11  ;;  %855 = vmatmul.mubr.bf16.vlgmr.msra.gmra.mxu1 %v932_v12 }
  0x3a   : > { %850 = vmatprep.mubr.bf16.mxu0 %v929_v13  ;;  %858 = vmatprep.mubr.bf16.mxu1 %v933_v14 }
  0x41   : > { %851 = vmatmul.mubr.bf16.gmra.mxu0 %v930_v15  ;;  %859 = vmatmul.mubr.bf16.gmra.mxu1 %v934_v16 }
  0xf9   : > { %v848_v17 = vpop.f32.mrf.mxu0  ;;  %v856_v18 = vpop.f32.mrf.mxu1 }
  0xfa   : > { %v555_v34 = vmul.f32 %v848_v17, %v848_v17  ;;  %v563_v4 = vmul.f32 %v856_v18, %v856_v18 }
  0xfb   : > { %v389_v19 = vpop.f32.mrf.mxu0  ;;  %v421_v20 = vpop.f32.mrf.mxu1 }
  0xfc   : > { %v553_v25 = vmul.f32 %v389_v19, %v389_v19  ;;  %v561_v62 = vmul.f32 %v421_v20, %v421_v20 }
  0xfd   : > { %v849_v21 = vpop.f32.mrf.mxu0  ;;  %v857_v22 = vpop.f32.mrf.mxu1 }
  0xfe   : > { %v775_v23 = vpack.c.bf16 %v849_v21, %v848_v17  ;;  %v795_v24 = vpack.c.bf16 %v857_v22, %v856_v18  ;;  %v556_v39 = vmul.f32 %v849_v21, %v849_v21  ;;  %v564_v7 = vmul.f32 %v857_v22, %v857_v22 }
  0xff   : > { %v392_v26 = vpop.f32.mrf.mxu0  ;;  %v424_v27 = vpop.f32.mrf.mxu1 }
 0x100   : > { %807 = vst [vmem:[%s1039_s5 + $0x8] sm:$0xff] %v775_v23   ;;  %v770_v28 = vpack.c.bf16 %v392_v26, %v389_v19  ;;  %v532_v29 = vadd.f32 %v392_v26, %v389_v19  ;;  %v554_v30 = vmul.f32 %v392_v26, %v392_v26  ;;  %811 = vst [vmem:[%s1039_s5 + $0x28] sm:$0xff] %v795_v24  }
 0x101   : > { %v790_v31 = vpack.c.bf16 %v424_v27, %v421_v20  ;;  %v852_v32 = vpop.f32.mrf.mxu0  ;;  %v860_v33 = vpop.f32.mrf.mxu1  ;;  %v562_v2 = vmul.f32 %v424_v27, %v424_v27 }
 0x102   : > { %771 = vst [vmem:[%s1039_s5] sm:$0xff] %v770_v28   ;;  %v533_v35 = vadd.f32 %v848_v17, %v532_v29  ;;  %v569_v36 = vadd.f32 %v554_v30, %v553_v25  ;;  %v559_v56 = vmul.f32 %v852_v32, %v852_v32  ;;  %v567_v16 = vmul.f32 %v860_v33, %v860_v33 }
 0x103   : > { %810 = vst [vmem:[%s1039_s5 + $0x20] sm:$0xff] %v790_v31   ;;  %v405_v37 = vpop.f32.mrf.mxu0  ;;  %v437_v38 = vpop.f32.mrf.mxu1 }
 0x104   : > { %v570_v40 = vadd.f32 %v569_v36, %v555_v34  ;;  %v534_v41 = vadd.f32 %v849_v21, %v533_v35  ;;  %v557_v45 = vmul.f32 %v405_v37, %v405_v37  ;;  %v565_v11 = vmul.f32 %v437_v38, %v437_v38  ;;  %v590_v35 = vld [vmem:[%s1029_s26] sm:$0x3] }
 0x105   : > { %v853_v42 = vpop.f32.mrf.mxu0  ;;  %v861_v43 = vpop.f32.mrf.mxu1 }
 0x106   : > { %v535_v44 = vadd.f32 %v534_v41, %v405_v37  ;;  %v571_v46 = vadd.f32 %v570_v40, %v556_v39  ;;  %v785_v47 = vpack.c.bf16 %v853_v42, %v852_v32  ;;  %v805_v49 = vpack.c.bf16 %v861_v43, %v860_v33 }
 0x107   : > { %v408_v48 = vpop.f32.mrf.mxu0  ;;  %v440_v50 = vpop.f32.mrf.mxu1  ;;  %v560_v59 = vmul.f32 %v853_v42, %v853_v42  ;;  %v568_v21 = vmul.f32 %v861_v43, %v861_v43 }
 0x108   : > { %v572_v51 = vadd.f32 %v571_v46, %v557_v45  ;;  %809 = vst [vmem:[%s1039_s5 + $0x18] sm:$0xff] %v785_v47   ;;  %v780_v52 = vpack.c.bf16 %v408_v48, %v405_v37  ;;  %v536_v53 = vadd.f32 %v535_v44, %v408_v48  ;;  %v558_v54 = vmul.f32 %v408_v48, %v408_v48 }
 0x109   : > { %813 = vst [vmem:[%s1039_s5 + $0x38] sm:$0xff] %v805_v49   ;;  %v800_v55 = vpack.c.bf16 %v440_v50, %v437_v38  ;;  %v566_v15 = vmul.f32 %v440_v50, %v440_v50 }
 0x10a   : > { %808 = vst [vmem:[%s1039_s5 + $0x10] sm:$0xff] %v780_v52   ;;  %v537_v57 = vadd.f32 %v852_v32, %v536_v53  ;;  %v573_v58 = vadd.f32 %v572_v51, %v558_v54 }
 0x10b   : > { %812 = vst [vmem:[%s1039_s5 + $0x30] sm:$0xff] %v800_v55  }
 0x10c   : > { %v538_v60 = vadd.f32 %v853_v42, %v537_v57  ;;  %v574_v61 = vadd.f32 %v573_v58, %v559_v56 }
 0x10e   : > { %v575_v63 = vadd.f32 %v574_v61, %v560_v59  ;;  %v539_v0 = vadd.f32 %v538_v60, %v421_v20 }
 0x110   : > { %v540_v1 = vadd.f32 %v539_v0, %v424_v27  ;;  %v576_v3 = vadd.f32 %v575_v63, %v561_v62 }
 0x112   : > { %v541_v5 = vadd.f32 %v856_v18, %v540_v1  ;;  %v577_v6 = vadd.f32 %v576_v3, %v562_v2 }
 0x114   : > { %v578_v8 = vadd.f32 %v577_v6, %v563_v4  ;;  %v542_v9 = vadd.f32 %v857_v22, %v541_v5 }
 0x116   : > { %v543_v10 = vadd.f32 %v542_v9, %v437_v38  ;;  %v579_v12 = vadd.f32 %v578_v8, %v564_v7 }
 0x118   : > { %v580_v13 = vadd.f32 %v579_v12, %v565_v11  ;;  %v544_v14 = vadd.f32 %v543_v10, %v440_v50 }
 0x11a   : > { %v545_v17 = vadd.f32 %v860_v33, %v544_v14  ;;  %v581_v19 = vadd.f32 %v580_v13, %v566_v15 }
 0x11c   : > { %v546_v20 = vadd.f32 %v861_v43, %v545_v17  ;;  %v582_v23 = vadd.f32 %v581_v19, %v567_v16 }
 0x11e   : > { %v547_v24 = vrot.slane %v546_v20, 4  ;;  %v583_v25 = vadd.f32 %v582_v23, %v568_v21 }
 0x120   : > { %v548_v18 = vadd.f32 %v547_v24, %v546_v20  ;;  %v584_v26 = vrot.slane %v583_v25, 4 }
 0x122   : > { %v549_v27 = vrot.slane %v548_v18, 2  ;;  %v585_v22 = vadd.f32 %v584_v26, %v583_v25 }
 0x124   : > { %v550_v28 = vadd.f32 %v549_v27, %v548_v18  ;;  %v586_v29 = vrot.slane %v585_v22, 2 }
 0x126   : > { %v551_v30 = vrot.slane %v550_v28, 1  ;;  %v587_v31 = vadd.f32 %v586_v29, %v585_v22 }
 0x128   : > { %v588_v32 = vrot.slane %v587_v31, 1  ;;  %v552_v34 = vadd.f32 %v551_v30, %v550_v28 }
 0x12a   : > { %v589_v33 = vadd.f32 %v588_v32, %v587_v31 }
 0x12c   : > { %v592_v36 = vsel %vm591_vm0, %v552_v34, %v589_v33 }
 0x12d   : > { %v593_v37 = vadd.f32 %v592_v36, %v590_v35 }
 0x12f   : > { %594 = vst [vmem:[%s1029_s26] sm:$0x3] %v593_v37 }
 0x130 PF: > { %s14_s16 = sadd.s32 1, %s973_s16   ;;  %s1103_s12 = smov %s965_s14 }
 0x131   : > { %p11_p8 = scmp.ge.s32.totalorder %s14_s16, 6   ;;  %s1104_s13 = smov %s969_s15 }
 0x132   : > { %s1105_s14 = smov %s1108_s17  ;;  %s1106_s15 = smov %s1112_s18 }
 0x133   :  { %13 = sbr.rel (!%p11_p8) target bundleno = 3 (0x3), region = 74 }

</bundles_post_ra>
